<compile_context>
chip_gen: v5e
topology: v5e:2x2
jax: 0.10.0
libtpu: 0.0.40
codegen_flags: <defaults>
</compile_context>

<pallas_src>
import functools

import jax
import jax.numpy as jnp
from jax import lax
from jax.experimental import pallas as pl
from jax.experimental.pallas import tpu as pltpu  # noqa: F401  (see scaling notes)


def rnn_kernel(x_ref, wih_ref, whh_ref, b_ref, wout_ref, bout_ref, y_ref,
               *, batch, seq):
    """Refs:
      x_ref:    (B*T, I)     input, batch-major rows (row = b*T + t)
      wih_ref:  (I, H)       W_ih^T
      whh_ref:  (H, H)       W_hh^T
      b_ref:    (1, H)       b_ih + b_hh
      wout_ref: (H, O)       W_out^T
      bout_ref: (1, O)       b_out
      y_ref:    (1, B*T*O)   output, lane-dense, row-major (b, t, o) order
    """
    B, T = batch, seq
    H = whh_ref.shape[0]
    O = wout_ref.shape[1]

    # ---- Phase 1: input projection for all timesteps in one batched matmul.
    proj = (jnp.dot(x_ref[...], wih_ref[...],
                    preferred_element_type=jnp.float32)
            + b_ref[...])                               # (B*T, H)

    # Per-timestep (B, H) slabs from the batch-major rows: B static one-row
    # slices + one sublane concat each. They do not depend on h, so they sit
    # off the serial critical path.
    p_t = [
        jnp.concatenate(
            [proj[b * T + t:b * T + t + 1, :] for b in range(B)], axis=0)
        for t in range(T)
    ]

    # ---- Phase 2: serial recurrence, fully unrolled (T small & static).
    # Hidden states live in vregs (Python list); only the HxH matmul is on the
    # critical path of each step.
    whh = whh_ref[...]                                  # hoist weight load
    h = jnp.zeros((B, H), jnp.float32)
    hs = []
    for t in range(T):
        h = jnp.maximum(
            p_t[t] + jnp.dot(h, whh, preferred_element_type=jnp.float32), 0.0)
        hs.append(h)

    # ---- Phase 3: output projection, one matmul over all (batch, time) rows.
    # Reassemble hidden states batch-major (row = b*T + t) with static slices
    # + sublane concats (no 3D transpose / tiled-dim reshape needed).
    h_bm = jnp.concatenate(
        [jnp.concatenate([hs[t][b:b + 1, :] for t in range(T)], axis=0)
         for b in range(B)],
        axis=0)                                         # (B*T, H)
    y_rows = (jnp.dot(h_bm, wout_ref[...],
                      preferred_element_type=jnp.float32)
              + bout_ref[...])                          # (B*T, O)

    # Lane-dense flat store: pack the O=8-wide rows along lanes so the single
    # output store is not an 8/128 lane-masked vst. Built from static row
    # slices + a last-dim concat (well-supported), not a tiled-dim reshape.
    y_flat = jnp.concatenate(
        [y_rows[i:i + 1, :] for i in range(B * T)], axis=1)   # (1, B*T*O)
    y_ref[...] = y_flat.astype(y_ref.dtype)


def simple_rnn_forward(x, w_ih, w_hh, b_ih, b_hh, w_out, b_out):
    """x: (B, T, I) float32, batch_first. Returns (B, T, O)."""
    B, T, I = x.shape
    H = w_hh.shape[0]
    O = w_out.shape[0]

    # One-time parameter prep (tiny, constant under jit; pre-compute at model
    # init if H is large): transpose weights so the kernel does plain
    # row-major matmuls, and fuse the two RNN biases.
    wih_t = jnp.transpose(w_ih)                         # (I, H)
    whh_t = jnp.transpose(w_hh)                         # (H, H)
    b_rnn = (b_ih + b_hh).reshape(1, H)                 # (1, H)
    wout_t = jnp.transpose(w_out)                       # (H, O)
    b_o = b_out.reshape(1, O)                           # (1, O)

    # Free metadata reshape of a row-major HBM array: the kernel sees a clean
    # 2D (B*T, I) operand instead of reshaping a (B,T,I) ref in-kernel.
    x2d = x.reshape(B * T, I)

    y_flat = pl.pallas_call(
        functools.partial(rnn_kernel, batch=B, seq=T),
        out_shape=jax.ShapeDtypeStruct((1, B * T * O), jnp.float32),
        # Gridless: a single invocation with every operand VMEM-resident
        # (default whole-array blocks); constant weights are single-buffered
        # and there is no per-step pipeline overhead.
    )(x2d, wih_t, whh_t, b_rnn, wout_t, b_o)

    # Row-major-compatible reshape outside the kernel (free).
    return y_flat.reshape(B, T, O)


def simple_rnn_reference(x, w_ih, w_hh, b_ih, b_hh, w_out, b_out):
    """Pure-JAX reference for validation."""
    B, T, I = x.shape
    H = w_hh.shape[0]

    def step(h, x_t):
        h_new = jax.nn.relu(x_t @ w_ih.T + b_ih + h @ w_hh.T + b_hh)
        return h_new, h_new

    h0 = jnp.zeros((B, H), jnp.float32)
    _, hs = lax.scan(step, h0, jnp.transpose(x, (1, 0, 2)))
    hs = jnp.transpose(hs, (1, 0, 2))                   # (B, T, H)
    return hs @ w_out.T + b_out


if __name__ == "__main__":
    # Small shapes consistent with the module: batch=2, seq=8,
    # input_size=4, hidden_size=32, output_size=8.
    B, T, I, H, O = 2, 8, 4, 32, 8

    key = jax.random.PRNGKey(0)
    ks = jax.random.split(key, 7)
    bound = 1.0 / jnp.sqrt(H)   # PyTorch default init U(-1/sqrt(H), 1/sqrt(H))

    w_ih = jax.random.uniform(ks[0], (H, I), jnp.float32, -bound, bound)
    w_hh = jax.random.uniform(ks[1], (H, H), jnp.float32, -bound, bound)
    b_ih = jax.random.uniform(ks[2], (H,), jnp.float32, -bound, bound)
    b_hh = jax.random.uniform(ks[3], (H,), jnp.float32, -bound, bound)
    w_out = jax.random.uniform(ks[4], (O, H), jnp.float32, -bound, bound)
    b_out = jax.random.uniform(ks[5], (O,), jnp.float32, -bound, bound)
    x = jax.random.normal(ks[6], (B, T, I), jnp.float32)

    y = simple_rnn_forward(x, w_ih, w_hh, b_ih, b_hh, w_out, b_out)
    y = jax.block_until_ready(y)

    y_ref = simple_rnn_reference(x, w_ih, w_hh, b_ih, b_hh, w_out, b_out)
    assert y.shape == (B, T, O)
    assert jnp.allclose(y, y_ref, atol=1e-4, rtol=1e-4), "mismatch vs reference"

    print("KERNEL_OK")
</pallas_src>

<mosaic_0001>
module attributes {stable_mosaic.version = 11 : i64} {
  func.func @rnn_kernel(%arg0: memref<16x4xf32, #tpu.memory_space<vmem>>, %arg1: memref<4x32xf32, #tpu.memory_space<vmem>>, %arg2: memref<32x32xf32, #tpu.memory_space<vmem>>, %arg3: memref<1x32xf32, #tpu.memory_space<vmem>>, %arg4: memref<32x8xf32, #tpu.memory_space<vmem>>, %arg5: memref<1x8xf32, #tpu.memory_space<vmem>>, %arg6: memref<1x128xf32, #tpu.memory_space<vmem>>) attributes {dimension_semantics = [], scalar_prefetch = 0 : i64, scratch_operands = 0 : i64, tpu.core_type = #tpu.core_type<tc>} {
    %c0 = arith.constant 0 : index
    %c0_0 = arith.constant 0 : index
    %0 = vector.load %arg0[%c0, %c0_0] : memref<16x4xf32, #tpu.memory_space<vmem>>, vector<16x4xf32>
    %c0_1 = arith.constant 0 : index
    %c0_2 = arith.constant 0 : index
    %1 = vector.load %arg1[%c0_1, %c0_2] : memref<4x32xf32, #tpu.memory_space<vmem>>, vector<4x32xf32>
    %cst = arith.constant dense<0.000000e+00> : vector<16x32xf32>
    %2 = tpu.matmul %0, %1, %cst {dimension_numbers = #tpu.dot_dimension_numbers<[1], [0], [0], [1], [0, 0, 1, 1], [], []>} : vector<16x4xf32>, vector<4x32xf32>, vector<16x32xf32> -> vector<16x32xf32>
    %c0_3 = arith.constant 0 : index
    %c0_4 = arith.constant 0 : index
    %3 = vector.load %arg3[%c0_3, %c0_4] : memref<1x32xf32, #tpu.memory_space<vmem>>, vector<1x32xf32>
    %4 = vector.broadcast %3 : vector<1x32xf32> to vector<16x32xf32>
    %5 = arith.addf %2, %4 : vector<16x32xf32>
    %6 = vector.extract_strided_slice %5 {offsets = [0, 0], sizes = [1, 32], strides = [1, 1]} : vector<16x32xf32> to vector<1x32xf32>
    %7 = vector.extract_strided_slice %5 {offsets = [8, 0], sizes = [1, 32], strides = [1, 1]} : vector<16x32xf32> to vector<1x32xf32>
    %8 = tpu.concatenate %6, %7 in 0 : vector<1x32xf32>, vector<1x32xf32> -> vector<2x32xf32>
    %9 = vector.extract_strided_slice %5 {offsets = [1, 0], sizes = [1, 32], strides = [1, 1]} : vector<16x32xf32> to vector<1x32xf32>
    %10 = vector.extract_strided_slice %5 {offsets = [9, 0], sizes = [1, 32], strides = [1, 1]} : vector<16x32xf32> to vector<1x32xf32>
    %11 = tpu.concatenate %9, %10 in 0 : vector<1x32xf32>, vector<1x32xf32> -> vector<2x32xf32>
    %12 = vector.extract_strided_slice %5 {offsets = [2, 0], sizes = [1, 32], strides = [1, 1]} : vector<16x32xf32> to vector<1x32xf32>
    %13 = vector.extract_strided_slice %5 {offsets = [10, 0], sizes = [1, 32], strides = [1, 1]} : vector<16x32xf32> to vector<1x32xf32>
    %14 = tpu.concatenate %12, %13 in 0 : vector<1x32xf32>, vector<1x32xf32> -> vector<2x32xf32>
    %15 = vector.extract_strided_slice %5 {offsets = [3, 0], sizes = [1, 32], strides = [1, 1]} : vector<16x32xf32> to vector<1x32xf32>
    %16 = vector.extract_strided_slice %5 {offsets = [11, 0], sizes = [1, 32], strides = [1, 1]} : vector<16x32xf32> to vector<1x32xf32>
    %17 = tpu.concatenate %15, %16 in 0 : vector<1x32xf32>, vector<1x32xf32> -> vector<2x32xf32>
    %18 = vector.extract_strided_slice %5 {offsets = [4, 0], sizes = [1, 32], strides = [1, 1]} : vector<16x32xf32> to vector<1x32xf32>
    %19 = vector.extract_strided_slice %5 {offsets = [12, 0], sizes = [1, 32], strides = [1, 1]} : vector<16x32xf32> to vector<1x32xf32>
    %20 = tpu.concatenate %18, %19 in 0 : vector<1x32xf32>, vector<1x32xf32> -> vector<2x32xf32>
    %21 = vector.extract_strided_slice %5 {offsets = [5, 0], sizes = [1, 32], strides = [1, 1]} : vector<16x32xf32> to vector<1x32xf32>
    %22 = vector.extract_strided_slice %5 {offsets = [13, 0], sizes = [1, 32], strides = [1, 1]} : vector<16x32xf32> to vector<1x32xf32>
    %23 = tpu.concatenate %21, %22 in 0 : vector<1x32xf32>, vector<1x32xf32> -> vector<2x32xf32>
    %24 = vector.extract_strided_slice %5 {offsets = [6, 0], sizes = [1, 32], strides = [1, 1]} : vector<16x32xf32> to vector<1x32xf32>
    %25 = vector.extract_strided_slice %5 {offsets = [14, 0], sizes = [1, 32], strides = [1, 1]} : vector<16x32xf32> to vector<1x32xf32>
    %26 = tpu.concatenate %24, %25 in 0 : vector<1x32xf32>, vector<1x32xf32> -> vector<2x32xf32>
    %27 = vector.extract_strided_slice %5 {offsets = [7, 0], sizes = [1, 32], strides = [1, 1]} : vector<16x32xf32> to vector<1x32xf32>
    %28 = vector.extract_strided_slice %5 {offsets = [15, 0], sizes = [1, 32], strides = [1, 1]} : vector<16x32xf32> to vector<1x32xf32>
    %29 = tpu.concatenate %27, %28 in 0 : vector<1x32xf32>, vector<1x32xf32> -> vector<2x32xf32>
    %c0_5 = arith.constant 0 : index
    %c0_6 = arith.constant 0 : index
    %30 = vector.load %arg2[%c0_5, %c0_6] : memref<32x32xf32, #tpu.memory_space<vmem>>, vector<32x32xf32>
    %cst_7 = arith.constant 0.000000e+00 : f32
    %31 = vector.broadcast %cst_7 : f32 to vector<2x32xf32>
    %cst_8 = arith.constant dense<0.000000e+00> : vector<2x32xf32>
    %32 = tpu.matmul %31, %30, %cst_8 {dimension_numbers = #tpu.dot_dimension_numbers<[1], [0], [0], [1], [0, 0, 1, 1], [], []>} : vector<2x32xf32>, vector<32x32xf32>, vector<2x32xf32> -> vector<2x32xf32>
    %33 = arith.addf %8, %32 : vector<2x32xf32>
    %cst_9 = arith.constant 0.000000e+00 : f32
    %34 = vector.broadcast %cst_9 : f32 to vector<2x32xf32>
    %35 = arith.maximumf %33, %34 : vector<2x32xf32>
    %cst_10 = arith.constant dense<0.000000e+00> : vector<2x32xf32>
    %36 = tpu.matmul %35, %30, %cst_10 {dimension_numbers = #tpu.dot_dimension_numbers<[1], [0], [0], [1], [0, 0, 1, 1], [], []>} : vector<2x32xf32>, vector<32x32xf32>, vector<2x32xf32> -> vector<2x32xf32>
    %37 = arith.addf %11, %36 : vector<2x32xf32>
    %cst_11 = arith.constant 0.000000e+00 : f32
    %38 = vector.broadcast %cst_11 : f32 to vector<2x32xf32>
    %39 = arith.maximumf %37, %38 : vector<2x32xf32>
    %cst_12 = arith.constant dense<0.000000e+00> : vector<2x32xf32>
    %40 = tpu.matmul %39, %30, %cst_12 {dimension_numbers = #tpu.dot_dimension_numbers<[1], [0], [0], [1], [0, 0, 1, 1], [], []>} : vector<2x32xf32>, vector<32x32xf32>, vector<2x32xf32> -> vector<2x32xf32>
    %41 = arith.addf %14, %40 : vector<2x32xf32>
    %cst_13 = arith.constant 0.000000e+00 : f32
    %42 = vector.broadcast %cst_13 : f32 to vector<2x32xf32>
    %43 = arith.maximumf %41, %42 : vector<2x32xf32>
    %cst_14 = arith.constant dense<0.000000e+00> : vector<2x32xf32>
    %44 = tpu.matmul %43, %30, %cst_14 {dimension_numbers = #tpu.dot_dimension_numbers<[1], [0], [0], [1], [0, 0, 1, 1], [], []>} : vector<2x32xf32>, vector<32x32xf32>, vector<2x32xf32> -> vector<2x32xf32>
    %45 = arith.addf %17, %44 : vector<2x32xf32>
    %cst_15 = arith.constant 0.000000e+00 : f32
    %46 = vector.broadcast %cst_15 : f32 to vector<2x32xf32>
    %47 = arith.maximumf %45, %46 : vector<2x32xf32>
    %cst_16 = arith.constant dense<0.000000e+00> : vector<2x32xf32>
    %48 = tpu.matmul %47, %30, %cst_16 {dimension_numbers = #tpu.dot_dimension_numbers<[1], [0], [0], [1], [0, 0, 1, 1], [], []>} : vector<2x32xf32>, vector<32x32xf32>, vector<2x32xf32> -> vector<2x32xf32>
    %49 = arith.addf %20, %48 : vector<2x32xf32>
    %cst_17 = arith.constant 0.000000e+00 : f32
    %50 = vector.broadcast %cst_17 : f32 to vector<2x32xf32>
    %51 = arith.maximumf %49, %50 : vector<2x32xf32>
    %cst_18 = arith.constant dense<0.000000e+00> : vector<2x32xf32>
    %52 = tpu.matmul %51, %30, %cst_18 {dimension_numbers = #tpu.dot_dimension_numbers<[1], [0], [0], [1], [0, 0, 1, 1], [], []>} : vector<2x32xf32>, vector<32x32xf32>, vector<2x32xf32> -> vector<2x32xf32>
    %53 = arith.addf %23, %52 : vector<2x32xf32>
    %cst_19 = arith.constant 0.000000e+00 : f32
    %54 = vector.broadcast %cst_19 : f32 to vector<2x32xf32>
    %55 = arith.maximumf %53, %54 : vector<2x32xf32>
    %cst_20 = arith.constant dense<0.000000e+00> : vector<2x32xf32>
    %56 = tpu.matmul %55, %30, %cst_20 {dimension_numbers = #tpu.dot_dimension_numbers<[1], [0], [0], [1], [0, 0, 1, 1], [], []>} : vector<2x32xf32>, vector<32x32xf32>, vector<2x32xf32> -> vector<2x32xf32>
    %57 = arith.addf %26, %56 : vector<2x32xf32>
    %cst_21 = arith.constant 0.000000e+00 : f32
    %58 = vector.broadcast %cst_21 : f32 to vector<2x32xf32>
    %59 = arith.maximumf %57, %58 : vector<2x32xf32>
    %cst_22 = arith.constant dense<0.000000e+00> : vector<2x32xf32>
    %60 = tpu.matmul %59, %30, %cst_22 {dimension_numbers = #tpu.dot_dimension_numbers<[1], [0], [0], [1], [0, 0, 1, 1], [], []>} : vector<2x32xf32>, vector<32x32xf32>, vector<2x32xf32> -> vector<2x32xf32>
    %61 = arith.addf %29, %60 : vector<2x32xf32>
    %cst_23 = arith.constant 0.000000e+00 : f32
    %62 = vector.broadcast %cst_23 : f32 to vector<2x32xf32>
    %63 = arith.maximumf %61, %62 : vector<2x32xf32>
    %64 = vector.extract_strided_slice %35 {offsets = [0, 0], sizes = [1, 32], strides = [1, 1]} : vector<2x32xf32> to vector<1x32xf32>
    %65 = vector.extract_strided_slice %39 {offsets = [0, 0], sizes = [1, 32], strides = [1, 1]} : vector<2x32xf32> to vector<1x32xf32>
    %66 = vector.extract_strided_slice %43 {offsets = [0, 0], sizes = [1, 32], strides = [1, 1]} : vector<2x32xf32> to vector<1x32xf32>
    %67 = vector.extract_strided_slice %47 {offsets = [0, 0], sizes = [1, 32], strides = [1, 1]} : vector<2x32xf32> to vector<1x32xf32>
    %68 = vector.extract_strided_slice %51 {offsets = [0, 0], sizes = [1, 32], strides = [1, 1]} : vector<2x32xf32> to vector<1x32xf32>
    %69 = vector.extract_strided_slice %55 {offsets = [0, 0], sizes = [1, 32], strides = [1, 1]} : vector<2x32xf32> to vector<1x32xf32>
    %70 = vector.extract_strided_slice %59 {offsets = [0, 0], sizes = [1, 32], strides = [1, 1]} : vector<2x32xf32> to vector<1x32xf32>
    %71 = vector.extract_strided_slice %63 {offsets = [0, 0], sizes = [1, 32], strides = [1, 1]} : vector<2x32xf32> to vector<1x32xf32>
    %72 = tpu.concatenate %64, %65, %66, %67, %68, %69, %70, %71 in 0 : vector<1x32xf32>, vector<1x32xf32>, vector<1x32xf32>, vector<1x32xf32>, vector<1x32xf32>, vector<1x32xf32>, vector<1x32xf32>, vector<1x32xf32> -> vector<8x32xf32>
    %73 = vector.extract_strided_slice %35 {offsets = [1, 0], sizes = [1, 32], strides = [1, 1]} : vector<2x32xf32> to vector<1x32xf32>
    %74 = vector.extract_strided_slice %39 {offsets = [1, 0], sizes = [1, 32], strides = [1, 1]} : vector<2x32xf32> to vector<1x32xf32>
    %75 = vector.extract_strided_slice %43 {offsets = [1, 0], sizes = [1, 32], strides = [1, 1]} : vector<2x32xf32> to vector<1x32xf32>
    %76 = vector.extract_strided_slice %47 {offsets = [1, 0], sizes = [1, 32], strides = [1, 1]} : vector<2x32xf32> to vector<1x32xf32>
    %77 = vector.extract_strided_slice %51 {offsets = [1, 0], sizes = [1, 32], strides = [1, 1]} : vector<2x32xf32> to vector<1x32xf32>
    %78 = vector.extract_strided_slice %55 {offsets = [1, 0], sizes = [1, 32], strides = [1, 1]} : vector<2x32xf32> to vector<1x32xf32>
    %79 = vector.extract_strided_slice %59 {offsets = [1, 0], sizes = [1, 32], strides = [1, 1]} : vector<2x32xf32> to vector<1x32xf32>
    %80 = vector.extract_strided_slice %63 {offsets = [1, 0], sizes = [1, 32], strides = [1, 1]} : vector<2x32xf32> to vector<1x32xf32>
    %81 = tpu.concatenate %73, %74, %75, %76, %77, %78, %79, %80 in 0 : vector<1x32xf32>, vector<1x32xf32>, vector<1x32xf32>, vector<1x32xf32>, vector<1x32xf32>, vector<1x32xf32>, vector<1x32xf32>, vector<1x32xf32> -> vector<8x32xf32>
    %82 = tpu.concatenate %72, %81 in 0 : vector<8x32xf32>, vector<8x32xf32> -> vector<16x32xf32>
    %c0_24 = arith.constant 0 : index
    %c0_25 = arith.constant 0 : index
    %83 = vector.load %arg4[%c0_24, %c0_25] : memref<32x8xf32, #tpu.memory_space<vmem>>, vector<32x8xf32>
    %cst_26 = arith.constant dense<0.000000e+00> : vector<16x8xf32>
    %84 = tpu.matmul %82, %83, %cst_26 {dimension_numbers = #tpu.dot_dimension_numbers<[1], [0], [0], [1], [0, 0, 1, 1], [], []>} : vector<16x32xf32>, vector<32x8xf32>, vector<16x8xf32> -> vector<16x8xf32>
    %c0_27 = arith.constant 0 : index
    %c0_28 = arith.constant 0 : index
    %85 = vector.load %arg5[%c0_27, %c0_28] : memref<1x8xf32, #tpu.memory_space<vmem>>, vector<1x8xf32>
    %86 = vector.broadcast %85 : vector<1x8xf32> to vector<16x8xf32>
    %87 = arith.addf %84, %86 : vector<16x8xf32>
    %88 = vector.extract_strided_slice %87 {offsets = [0, 0], sizes = [1, 8], strides = [1, 1]} : vector<16x8xf32> to vector<1x8xf32>
    %89 = vector.extract_strided_slice %87 {offsets = [1, 0], sizes = [1, 8], strides = [1, 1]} : vector<16x8xf32> to vector<1x8xf32>
    %90 = vector.extract_strided_slice %87 {offsets = [2, 0], sizes = [1, 8], strides = [1, 1]} : vector<16x8xf32> to vector<1x8xf32>
    %91 = vector.extract_strided_slice %87 {offsets = [3, 0], sizes = [1, 8], strides = [1, 1]} : vector<16x8xf32> to vector<1x8xf32>
    %92 = vector.extract_strided_slice %87 {offsets = [4, 0], sizes = [1, 8], strides = [1, 1]} : vector<16x8xf32> to vector<1x8xf32>
    %93 = vector.extract_strided_slice %87 {offsets = [5, 0], sizes = [1, 8], strides = [1, 1]} : vector<16x8xf32> to vector<1x8xf32>
    %94 = vector.extract_strided_slice %87 {offsets = [6, 0], sizes = [1, 8], strides = [1, 1]} : vector<16x8xf32> to vector<1x8xf32>
    %95 = vector.extract_strided_slice %87 {offsets = [7, 0], sizes = [1, 8], strides = [1, 1]} : vector<16x8xf32> to vector<1x8xf32>
    %96 = vector.extract_strided_slice %87 {offsets = [8, 0], sizes = [1, 8], strides = [1, 1]} : vector<16x8xf32> to vector<1x8xf32>
    %97 = vector.extract_strided_slice %87 {offsets = [9, 0], sizes = [1, 8], strides = [1, 1]} : vector<16x8xf32> to vector<1x8xf32>
    %98 = vector.extract_strided_slice %87 {offsets = [10, 0], sizes = [1, 8], strides = [1, 1]} : vector<16x8xf32> to vector<1x8xf32>
    %99 = vector.extract_strided_slice %87 {offsets = [11, 0], sizes = [1, 8], strides = [1, 1]} : vector<16x8xf32> to vector<1x8xf32>
    %100 = vector.extract_strided_slice %87 {offsets = [12, 0], sizes = [1, 8], strides = [1, 1]} : vector<16x8xf32> to vector<1x8xf32>
    %101 = vector.extract_strided_slice %87 {offsets = [13, 0], sizes = [1, 8], strides = [1, 1]} : vector<16x8xf32> to vector<1x8xf32>
    %102 = vector.extract_strided_slice %87 {offsets = [14, 0], sizes = [1, 8], strides = [1, 1]} : vector<16x8xf32> to vector<1x8xf32>
    %103 = vector.extract_strided_slice %87 {offsets = [15, 0], sizes = [1, 8], strides = [1, 1]} : vector<16x8xf32> to vector<1x8xf32>
    %104 = tpu.concatenate %88, %89, %90, %91, %92, %93, %94, %95, %96, %97, %98, %99, %100, %101, %102, %103 in 1 : vector<1x8xf32>, vector<1x8xf32>, vector<1x8xf32>, vector<1x8xf32>, vector<1x8xf32>, vector<1x8xf32>, vector<1x8xf32>, vector<1x8xf32>, vector<1x8xf32>, vector<1x8xf32>, vector<1x8xf32>, vector<1x8xf32>, vector<1x8xf32>, vector<1x8xf32>, vector<1x8xf32>, vector<1x8xf32> -> vector<1x128xf32>
    %c0_29 = arith.constant 0 : index
    %c0_30 = arith.constant 0 : index
    %105 = vector.load %arg6[%c0_29, %c0_30] : memref<1x128xf32, #tpu.memory_space<vmem>>, vector<1x128xf32>
    tpu.vector_store %arg6[%c0_29, %c0_30], %104 {strides = array<i32>} : memref<1x128xf32, #tpu.memory_space<vmem>>, vector<1x128xf32>,
    return
  }
}

</mosaic_0001>

<bundles_post_ra>
// kernel: tpu_custom_call.1
= control target key start
LH: loop header
LB: loop body
LE: loop exit
PB: predicated region body
PF: predicated region fallthrough
CT: control target
= control target key end

     0   :  { %vm38_vm0 = vcmask 1043456   ;;  %vm31_vm1 = vcmask 31744   ;;  %s720_s0 = inlined_call_operand.vmem [shape: f32[16,4], index: 0, kind: input, shape index: {}]   ;;  %s721_s1 = inlined_call_operand.vmem [shape: f32[4,32], index: 1, kind: input, shape index: {}]   ;;  %s722_s2 = inlined_call_operand.vmem [shape: f32[32,32], index: 2, kind: input, shape index: {}]   ;;  %s723_s3 = inlined_call_operand.vmem [shape: f32[1,32], index: 3, kind: input, shape index: {}]   ;;  %s724_s4 = inlined_call_operand.vmem [shape: f32[32,8], index: 4, kind: input, shape index: {}]   ;;  %s725_s5 = inlined_call_operand.vmem [shape: f32[1,8], index: 5, kind: input, shape index: {}]   ;;  %s726_s6 = inlined_call_operand.hbm [shape: f32[1,128], index: 6, kind: output, shape index: {}]  }
   0x1   :  { %v26_v0 = vld [vmem:[%s721_s1] sm:$0xf]  ;;  %v619_v2 = vld [vmem:[%s722_s2 + $0x18] sm:$0xff]  ;;  %v626_v3 = vld [vmem:[%s722_s2 + $0x10] sm:$0xff] }
   0x2   :  { %v24_v1 = vld [vmem:[%s720_s0] sm:$0xff]  ;;  %501 = vmatpush.msk.msra.mxu0 %vm38_vm0, %v26_v0  ;;  %124 = vmatpush.msra.mxu1 %v619_v2  ;;  %v632_v4 = vld [vmem:[%s722_s2 + $0x8] sm:$0xff] }
   0x3   :  { %502 = vmatmul.msk.f32.vlgmr.msra.gmra.mxu0 %vm31_vm1, %v24_v1  ;;  %149 = vmatpush.msra.mxu3 %v619_v2 }
   0x4   :  { %125 = vmatpush.msra.mxu1 %v626_v3  ;;  %224 = vmatpush.msra.mxu2 %v619_v2 }
   0x5   :  { %11 = vsyncpa [#allocation3], 0  ;;  %v640_v5 = vld [vmem:[%s722_s2] sm:$0xff]  ;;  %150 = vmatpush.msra.mxu3 %v626_v3  ;;  %274 = vmatpush.msrb.mxu0 %v619_v2  ;;  %v25_v6 = vld [vmem:[%s720_s0 + $0x8] sm:$0xff]  ;;  %v558_v7 = vmov 0.0   ;;  %vm68_vm2 = vcmask 1040384  }
   0x6   :  { %126 = vmatpush.msra.mxu1 %v632_v4  ;;  %225 = vmatpush.msra.mxu2 %v626_v3  ;;  %v530_v9 = vld [vmem:[%s723_s3] ss:$0 sm:$0xff]  ;;  %vm108_vm3 = vcmask 261120   ;;  %vm325_vm4 = vcmask 1041408   ;;  %vm327_vm5 = vcmask 1042432   ;;  %vm330_vm6 = vcmask 1044480  }
   0x7   :  { %151 = vmatpush.msra.mxu3 %v632_v4  ;;  %275 = vmatpush.msrb.mxu0 %v626_v3  ;;  %vm332_vm7 = vcmask 1045504   ;;  %vm334_vm8 = vcmask 1046528   ;;  %s560_s19 = smov 24   ;;  %s561_s20 = smov 8   ;;  %vm455_vm9 = vcmask 64512   ;;  %vm457_vm10 = vcmask 130048  }
   0x8   :  { %127 = vmatpush.msra.mxu1 %v640_v5  ;;  %226 = vmatpush.msra.mxu2 %v632_v4  ;;  %s562_s21 = smov 48   ;;  %s563_s22 = smov 32   ;;  %vm459_vm11 = vcmask 195584   ;;  %vm462_vm12 = vcmask 326656   ;;  %vm464_vm13 = vcmask 392192   ;;  %vm466_vm14 = vcmask 457728  }
   0x9   :  { %128 = vmatmul.f32.vlgmr.msra.gmra.mxu1 %v558_v7  ;;  %152 = vmatpush.msra.mxu3 %v640_v5  ;;  %s565_s23 = smov 72   ;;  %s566_s24 = smov 64   ;;  %vm468_vm15 = vcmask 523264  }
   0xa   :  { %199 = vmatpush.msrb.mxu1 %v619_v2  ;;  %227 = vmatpush.msra.mxu2 %v640_v5  ;;  %s567_s25 = smov 56   ;;  %s568_s26 = smov 96  }
   0xb   :  { %174 = vmatpush.msrb.mxu3 %v619_v2  ;;  %503 = vmatmul.msk.f32.gmra.mxu0 %vm31_vm1, %v25_v6  ;;  %s569_s27 = smov 88   ;;  %s570_s28 = smov 80   ;;  %vm472_vm1 = vcmask 654336  }
   0xc   :  { %200 = vmatpush.msrb.mxu1 %v626_v3  ;;  %276 = vmatpush.msrb.mxu0 %v632_v4  ;;  %s571_s1 = smov 120   ;;  %s572_s29 = smov 112  }
   0xd   :  { %175 = vmatpush.msrb.mxu3 %v626_v3  ;;  %s573_s30 = smov 104   ;;  %s574_s7 = smov [#allocation2]  }
   0xe   :  { %201 = vmatpush.msrb.mxu1 %v632_v4  ;;  %277 = vmatpush.msrb.mxu0 %v640_v5  ;;  %s490_s8 = sshll.u32 %s574_s7, 4  ;;  %s492_s2 = sshll.u32 %s726_s6, 4  ;;  %s491_s8 = int_to_ptr.vmem [resolvable:$true] %s490_s8  ;;  %s493_s2 = int_to_ptr.hbm [resolvable:$true] %s492_s2 }
   0xf   :  { %176 = vmatpush.msrb.mxu3 %v632_v4 }
  0x10   :  { %202 = vmatpush.msrb.mxu1 %v640_v5 }
  0x11   :  { %177 = vmatpush.msrb.mxu3 %v640_v5 }
  0x12   :  { %299 = vmatpush.msra.mxu1 %v619_v2 }
  0x14   :  { %300 = vmatpush.msra.mxu1 %v626_v3 }
  0x16   :  { %301 = vmatpush.msra.mxu1 %v632_v4 }
  0x18   :  { %302 = vmatpush.msra.mxu1 %v640_v5 }
  0x80   :  { %v59_v8 = vpop.f32.mrf.mxu0 }
  0x81   :  { %v60_v10 = vadd.f32 %v530_v9, %v59_v8 }
  0x83   :  { %v71_v13 = vrot.slane %v60_v10, 1  ;;  %v74_v14 = vrot.slane %v60_v10, 2  ;;  %v79_v15 = vrot.slane %v60_v10, 3  ;;  %v84_v16 = vrot.slane %v60_v10, 4 }
  0x84   :  { %v89_v17 = vrot.slane %v60_v10, 5  ;;  %v94_v18 = vrot.slane %v60_v10, 6  ;;  %v99_v31 = vrot.slane %v60_v10, 7 }
  0x86   :  { %v129_v20 = vpop.f32.mrf.mxu1 }
  0x88   :  { %v62_v11 = vpop.f32.mrf.mxu0 }
  0x89   :  { %v63_v12 = vadd.f32 %v530_v9, %v62_v11 }
  0x8b   :  { %v66_v19 = vrot.slane %v63_v12, 7  ;;  %v73_v21 = vsel %vm68_vm2, %v71_v13, %v63_v12  ;;  %v76_v22 = vrot.slane %v63_v12, 1  ;;  %v81_v23 = vrot.slane %v63_v12, 2 }
  0x8c   :  { %v86_v24 = vrot.slane %v63_v12, 3  ;;  %v91_v25 = vrot.slane %v63_v12, 4  ;;  %v96_v26 = vrot.slane %v63_v12, 5  ;;  %v101_v27 = vrot.slane %v63_v12, 6 }
  0x8d   :  { %v69_v28 = vsel %vm68_vm2, %v60_v10, %v66_v19  ;;  %v78_v29 = vsel %vm68_vm2, %v74_v14, %v76_v22  ;;  %v83_v30 = vsel %vm68_vm2, %v79_v15, %v81_v23  ;;  %v357_v19 = vld [vmem:[%s724_s4] sm:$0xff] }
  0x8e   :  { %v132_v32 = vadd.f32 %v129_v20, %v69_v28  ;;  %v88_v33 = vsel %vm68_vm2, %v84_v16, %v86_v24  ;;  %v93_v34 = vsel %vm68_vm2, %v89_v17, %v91_v25  ;;  %v98_v35 = vsel %vm68_vm2, %v94_v18, %v96_v26  ;;  %v360_v16 = vld [vmem:[%s724_s4 + $0x18] sm:$0xff]  ;;  %v359_v17 = vld [vmem:[%s724_s4 + $0x10] sm:$0xff]  ;;  %v358_v18 = vld [vmem:[%s724_s4 + $0x8] sm:$0xff]  ;;  %s559_s4 = smov 40  }
  0x8f   :  { %v681_v36 = vsel %vm68_vm2, %v99_v31, %v101_v27  ;;  %383 = vmatpush.msrb.mxu2 %v360_v16  ;;  %v531_v27 = vld [vmem:[%s725_s5] ss:$0 sm:$0xff]  ;;  %s564_s5 = smov 16  }
  0x90   :  { %v133_v37 = vmax.f32 %v132_v32, 0.0 }
  0x91   :  { %384 = vmatpush.msrb.mxu2 %v359_v17 }
  0x92   :  { %504 = vmatmul.msk.f32.vlgmr.msra.gmra.mxu3 %vm108_vm3, %v133_v37  ;;  %v336_v45 = vrot.slane %v133_v37, 1 }
  0x93   :  { %249 = vmatpush.msra.mxu3 %v619_v2  ;;  %385 = vmatpush.msrb.mxu2 %v358_v18 }
  0x95   :  { %250 = vmatpush.msra.mxu3 %v626_v3  ;;  %386 = vmatpush.msrb.mxu2 %v357_v19 }
  0x97   :  { %251 = vmatpush.msra.mxu3 %v632_v4 }
  0x99   :  { %252 = vmatpush.msra.mxu3 %v640_v5 }
 0x115   :  { %v154_v38 = vpop.f32.mrf.mxu3 }
 0x116   :  { %v157_v39 = vadd.f32 %v154_v38, %v73_v21 }
 0x118   :  { %v158_v40 = vmax.f32 %v157_v39, 0.0 }
 0x11a   :  { %505 = vmatmul.msk.f32.vlgmr.msrb.gmra.mxu3 %vm108_vm3, %v158_v40  ;;  %v309_v43 = vrot.slane %v158_v40, 7  ;;  %v350_v49 = vsel %vm68_vm2, %v336_v45, %v158_v40 }
 0x11c   :  { %v324_v48 = vsel %vm68_vm2, %v133_v37, %v309_v43  ;;  %vm474_vm2 = vcmask 719872  }
 0x19d   :  { %v179_v41 = vpop.f32.mrf.mxu3 }
 0x19e   :  { %v182_v42 = vadd.f32 %v179_v41, %v78_v29 }
 0x1a0   :  { %v183_v44 = vmax.f32 %v182_v42, 0.0 }
 0x1a2   :  { %v311_v46 = vrot.slane %v183_v44, 6  ;;  %v338_v47 = vrot.slane %v183_v44, 7  ;;  %506 = vmatmul.msk.f32.vlgmr.msrb.gmra.mxu1 %vm108_vm3, %v183_v44 }
 0x1a4   :  { %v326_v50 = vsel %vm325_vm4, %v324_v48, %v311_v46  ;;  %v351_v51 = vsel %vm325_vm4, %v350_v49, %v338_v47  ;;  %vm478_vm4 = vcmask 850944  }
 0x21f   :  { %v204_v52 = vpop.f32.mrf.mxu1 }
 0x220   :  { %v207_v53 = vadd.f32 %v204_v52, %v83_v30 }
 0x222   :  { %v208_v54 = vmax.f32 %v207_v53, 0.0 }
 0x224   :  { %v313_v55 = vrot.slane %v208_v54, 5  ;;  %v340_v56 = vrot.slane %v208_v54, 6  ;;  %507 = vmatmul.msk.f32.vlgmr.msra.gmra.mxu2 %vm108_vm3, %v208_v54 }
 0x226   :  { %v328_v57 = vsel %vm327_vm5, %v326_v50, %v313_v55  ;;  %v352_v58 = vsel %vm327_vm5, %v351_v51, %v340_v56  ;;  %vm480_vm5 = vcmask 916480  }
 0x2a7   :  { %v229_v59 = vpop.f32.mrf.mxu2 }
 0x2a8   :  { %v232_v60 = vadd.f32 %v229_v59, %v88_v33 }
 0x2aa   :  { %v233_v61 = vmax.f32 %v232_v60, 0.0 }
 0x2ac   :  { %v315_v62 = vrot.slane %v233_v61, 4  ;;  %v342_v63 = vrot.slane %v233_v61, 5  ;;  %508 = vmatmul.msk.f32.vlgmr.msra.gmra.mxu3 %vm108_vm3, %v233_v61 }
 0x2ae   :  { %v329_v0 = vsel %vm38_vm0, %v328_v57, %v315_v62  ;;  %v353_v1 = vsel %vm38_vm0, %v352_v58, %v342_v63  ;;  %vm470_vm0 = vcmask 588800  }
 0x32f   :  { %v254_v2 = vpop.f32.mrf.mxu3 }
 0x330   :  { %v257_v3 = vadd.f32 %v254_v2, %v93_v34 }
 0x332   :  { %v258_v4 = vmax.f32 %v257_v3, 0.0 }
 0x334   :  { %v317_v5 = vrot.slane %v258_v4, 3  ;;  %v344_v6 = vrot.slane %v258_v4, 4  ;;  %509 = vmatmul.msk.f32.vlgmr.msrb.gmra.mxu0 %vm108_vm3, %v258_v4 }
 0x336   :  { %v331_v7 = vsel %vm330_vm6, %v329_v0, %v317_v5  ;;  %v354_v8 = vsel %vm330_vm6, %v353_v1, %v344_v6  ;;  %vm482_vm6 = vcmask 982016  }
 0x3b1   :  { %v279_v9 = vpop.f32.mrf.mxu0 }
 0x3b2   :  { %v282_v10 = vadd.f32 %v279_v9, %v98_v35 }
 0x3b4   :  { %v283_v11 = vmax.f32 %v282_v10, 0.0 }
 0x3b6   :  { %v319_v12 = vrot.slane %v283_v11, 2  ;;  %v346_v13 = vrot.slane %v283_v11, 3  ;;  %510 = vmatmul.msk.f32.vlgmr.msra.gmra.mxu1 %vm108_vm3, %v283_v11 }
 0x3b8   :  { %v333_v14 = vsel %vm332_vm7, %v331_v7, %v319_v12  ;;  %v355_v15 = vsel %vm332_vm7, %v354_v8, %v346_v13 }
 0x433   :  { %v304_v20 = vpop.f32.mrf.mxu1 }
 0x434   :  { %v307_v21 = vadd.f32 %v304_v20, %v681_v36 }
 0x436   :  { %v308_v22 = vmax.f32 %v307_v21, 0.0 }
 0x438   :  { %v322_v23 = vrot.slane %v308_v22, 1  ;;  %v348_v24 = vrot.slane %v308_v22, 2 }
 0x43a   :  { %v335_v25 = vsel %vm334_vm8, %v333_v14, %v322_v23  ;;  %v356_v26 = vsel %vm334_vm8, %v355_v15, %v348_v24 }
 0x43b   :  { %511 = vmatmul.msk.f32.vlgmr.msrb.gmra.mxu2 %vm108_vm3, %v335_v25 }
 0x443   :  { %512 = vmatmul.msk.f32.gmra.mxu2 %vm108_vm3, %v356_v26 }
 0x4be   :  { %v388_v28 = vpop.f32.mrf.mxu2 }
 0x4bf   :  { %v389_v29 = vadd.f32 %v531_v27, %v388_v28 }
 0x4c1   :  { %v411_v30 = vrot.slane %v389_v29, 5  ;;  %v403_v31 = vrot.slane %v389_v29, 3  ;;  %v395_v32 = vrot.slane %v389_v29, 1  ;;  %v415_v33 = vrot.slane %v389_v29, 6 }
 0x4c2   :  { %v407_v34 = vrot.slane %v389_v29, 4  ;;  %v399_v36 = vrot.slane %v389_v29, 2  ;;  %v419_v39 = vrot.slane %v389_v29, 7 }
 0x4c3   :  { %412 = vrot.lane.b32.xlu2 %v411_v30, %s559_s4  ;;  %404 = vrot.lane.b32.xlu1 %v403_v31, %s560_s19 }
 0x4c4   :  { %396 = vrot.lane.b32.xlu0 %v395_v32, %s561_s20 }
 0x4c6   :  { %v391_v35 = vpop.f32.mrf.mxu2 }
 0x4c7   :  { %v392_v37 = vadd.f32 %v531_v27, %v391_v35 }
 0x4c9   :  { %v427_v38 = vrot.slane %v392_v37, 1  ;;  %v439_v40 = vrot.slane %v392_v37, 4  ;;  %v435_v41 = vrot.slane %v392_v37, 3  ;;  %v431_v42 = vrot.slane %v392_v37, 2 }
 0x4ca   :  { %v451_v43 = vrot.slane %v392_v37, 7  ;;  %v447_v44 = vrot.slane %v392_v37, 6  ;;  %v443_v45 = vrot.slane %v392_v37, 5 }
 0x4cb   :  { %416 = vrot.lane.b32.xlu2 %v415_v33, %s562_s21  ;;  %408 = vrot.lane.b32.xlu1 %v407_v34, %s563_s22 }
 0x4cc   :  { %400 = vrot.lane.b32.xlu0 %v399_v36, %s564_s5 }
 0x4d3   :  { %428 = vrot.lane.b32.xlu2 %v427_v38, %s565_s23  ;;  %424 = vrot.lane.b32.xlu1 %v392_v37, %s566_s24 }
 0x4d4   :  { %420 = vrot.lane.b32.xlu0 %v419_v39, %s567_s25 }
 0x4db   :  { %440 = vrot.lane.b32.xlu2 %v439_v40, %s568_s26  ;;  %436 = vrot.lane.b32.xlu1 %v435_v41, %s569_s27 }
 0x4dc   :  { %432 = vrot.lane.b32.xlu0 %v431_v42, %s570_s28 }
 0x4e3   :  { %452 = vrot.lane.b32.xlu2 %v451_v43, %s571_s1  ;;  %448 = vrot.lane.b32.xlu1 %v447_v44, %s572_s29 }
 0x4e4   :  { %444 = vrot.lane.b32.xlu0 %v443_v45, %s573_s30 }
 0x51d   :  { %v413_v46 = vpop.permute.xlu2 %412 }
 0x525   :  { %v417_v49 = vpop.permute.xlu2 %416 }
 0x52d   :  { %v429_v56 = vpop.permute.xlu2 %428 }
 0x535   :  { %v405_v47 = vpop.permute.xlu1 %404  ;;  %v441_v0 = vpop.permute.xlu2 %440 }
 0x536   :  { %v397_v48 = vpop.permute.xlu0 %396 }
 0x537   :  { %v456_v51 = vsel %vm455_vm9, %v389_v29, %v397_v48 }
 0x53d   :  { %v409_v50 = vpop.permute.xlu1 %408  ;;  %v453_v9 = vpop.permute.xlu2 %452 }
 0x53e   :  { %v401_v52 = vpop.permute.xlu0 %400 }
 0x53f   :  { %v458_v53 = vsel %vm457_vm10, %v456_v51, %v401_v52 }
 0x540   :  { %v460_v54 = vsel %vm459_vm11, %v458_v53, %v405_v47 }
 0x541   :  { %v461_v55 = vsel %vm108_vm3, %v460_v54, %v409_v50  ;;  %vm476_vm3 = vcmask 785408  }
 0x542   :  { %v463_v58 = vsel %vm462_vm12, %v461_v55, %v413_v46 }
 0x543   :  { %v465_v60 = vsel %vm464_vm13, %v463_v58, %v417_v49 }
 0x545   :  { %v425_v57 = vpop.permute.xlu1 %424 }
 0x546   :  { %v421_v59 = vpop.permute.xlu0 %420 }
 0x547   :  { %v467_v61 = vsel %vm466_vm14, %v465_v60, %v421_v59 }
 0x548   :  { %v469_v62 = vsel %vm468_vm15, %v467_v61, %v425_v57 }
 0x549   :  { %v471_v2 = vsel %vm470_vm0, %v469_v62, %v429_v56 }
 0x54d   :  { %v437_v63 = vpop.permute.xlu1 %436 }
 0x54e   :  { %v433_v1 = vpop.permute.xlu0 %432 }
 0x54f   :  { %v473_v3 = vsel %vm472_vm1, %v471_v2, %v433_v1 }
 0x550   :  { %v475_v4 = vsel %vm474_vm2, %v473_v3, %v437_v63 }
 0x551   :  { %v477_v6 = vsel %vm476_vm3, %v475_v4, %v441_v0 }
 0x555   :  { %v449_v5 = vpop.permute.xlu1 %448 }
 0x556   :  { %v445_v7 = vpop.permute.xlu0 %444 }
 0x557   :  { %v479_v8 = vsel %vm478_vm4, %v477_v6, %v445_v7 }
 0x558   :  { %v481_v10 = vsel %vm480_vm5, %v479_v8, %v449_v5 }
 0x559   :  { %v483_v11 = vsel %vm482_vm6, %v481_v10, %v453_v9 }
 0x55a   :  { %484 = vst [vmem:[#allocation2] sm:$0x1] %v483_v11 }
 0x55b   :  { %495 = dma.vmem_to_hbm [thread:$0]  %s491_s8, 16, %s493_s2, [#allocation3]  }
 0x55c   :  { %556 = dma.done.wait [#allocation3], 16  }
 0x55d   :  { %557 = vsyncadd [#allocation3], 4294967280 }
 0x55e   :  { %500 = vsyncpa [#allocation3], 1 }

</bundles_post_ra>
